<compile_context>
chip_gen: v7x
topology: tpu7x:2x2x1
jax: 0.10.0
libtpu: 0.0.40
codegen_flags: <defaults>
</compile_context>

<pallas_src>
import functools

import jax
import jax.numpy as jnp
from jax.experimental import pallas as pl
from jax.experimental.pallas import tpu as pltpu


def _round_up(x, m):
    return ((x + m - 1) // m) * m


def _vmem_budget():
    """Returns (vmem_limit_bytes, tile_budget_bytes), generation-aware."""
    try:
        cap = pltpu.get_tpu_info().vmem_capacity_bytes
    except Exception:
        cap = 64 * 1024 * 1024                       # assume smallest generation
    if cap >= 100 * 1024 * 1024:                     # v5e / v6e: 128 MiB physical
        return 64 * 1024 * 1024, 40 * 1024 * 1024
    return 40 * 1024 * 1024, 24 * 1024 * 1024        # v7x-class: 64 MiB physical


def _choose_tile_n(n, c, itemsize, has_alpha, budget_bytes):
    """Rows per tile; budget counts in-kernel f32 temporaries, not just DMA."""
    c_pad = max(128, _round_up(c, 128))
    stream = 2 * c_pad * itemsize       # logits tile, native dtype, double-buffered
    temps = 16 * c_pad                  # ~4 live (TN, C) f32 temporaries in VMEM/vregs
    side = 1024 * (2 if has_alpha else 1)  # (TN,1) targets/alpha_t: 4 B of data
                                           # lane-pads to 512 B/row, x2 buffers each
    epi = 2048                          # (TN,1) f32 epilogue temporaries (lse/ce/pt/..)
    bytes_per_row = stream + temps + side + epi
    tn = max(16, int(budget_bytes // bytes_per_row))
    # v7x has 2 TensorCores: keep at least 2 grid steps so the "parallel" axis
    # actually shards work across both cores (no-op on single-core v5e/v6e).
    if n > 16:
        tn = min(tn, _round_up(-(-n // 2), 16))
    tn = min(tn, _round_up(n, 16))      # don't tile past the (padded) problem
    return _round_up(tn, 16)            # sublane-aligned for both f32 and bf16


def _focal_loss_kernel(*refs, gamma, n_valid, has_alpha, per_example):
    if has_alpha:
        logits_ref, targets_ref, alpha_t_ref, out_ref = refs
    else:
        logits_ref, targets_ref, out_ref = refs
        alpha_t_ref = None

    x = logits_ref[...].astype(jnp.float32)      # (TN, C), upcast from native dtype
    t = targets_ref[...]                         # (TN, 1) int32
    tn, c = x.shape

    # All math below is row-local; remainder-tile garbage rows are discarded by
    # the final per-row mask (mean/sum) or sliced off after the call (none), so
    # no up-front full-tile mask is needed (saves one (TN, C) VPU select pass).

    # cross_entropy(reduction='none'):  ce_i = logsumexp(x_i) - x_i[t_i]
    m = jnp.max(x, axis=-1, keepdims=True)
    lse = m + jnp.log(jnp.sum(jnp.exp(x - m), axis=-1, keepdims=True))
    cls = jax.lax.broadcasted_iota(jnp.int32, (1, c), 1)    # (1, C), broadcast vs (TN,1)
    onehot = cls == t                                       # (TN, C)
    x_t = jnp.sum(jnp.where(onehot, x, 0.0), axis=-1, keepdims=True)
    ce = lse - x_t                               # (TN, 1)

    # focal modulation: (1 - pt)^gamma with pt = exp(-ce)
    pt = jnp.exp(-ce)
    base = jnp.maximum(1.0 - pt, 0.0)            # guard tiny fp-rounding negatives
    g_int = int(gamma)
    if float(g_int) == float(gamma) and 0 <= g_int <= 8:
        # Integer gamma: repeated VALU multiplies; avoids EUP exp/log per row
        # and the 0^0 NaN edge.
        if g_int == 0:
            mod = jnp.ones_like(base)
        else:
            mod = base
            for _ in range(g_int - 1):
                mod = mod * base
    else:
        mod = jnp.power(base, jnp.float32(gamma))
    focal = mod * ce                             # (TN, 1)

    if has_alpha:
        # alpha_t = alpha[targets] was pre-gathered in the wrapper: no per-tile
        # (1, C) alpha DMA and one fewer (TN, C) select + cross-lane reduction.
        focal = alpha_t_ref[...] * focal

    if per_example:
        out_ref[...] = focal
    else:
        pid = pl.program_id(0)
        row = jax.lax.broadcasted_iota(jnp.int32, (tn, 1), 0)
        valid = (pid * tn + row) < n_valid       # mask rows past the true N
        partial = jnp.sum(jnp.where(valid, focal, 0.0))
        # Lane-dense, unmasked (1, 8, 128) store; consumer reads [0, 0].
        out_ref[...] = jnp.zeros((1, 8, 128), jnp.float32) + partial


def focal_loss(inputs, targets, alpha=None, gamma=2.0, reduction="mean",
               tile_n=None):
    """Pallas TPU implementation of FocalLoss.forward.

    `inputs` may be f32 or bf16; on the HBM-bound v5e prefer feeding bf16
    logits (the kernel streams them in their native dtype and upcasts on-chip).
    """
    assert inputs.ndim == 2, "expected (N, C) logits"
    n, c = inputs.shape
    if reduction not in ("mean", "sum", "none"):
        raise ValueError(f"unsupported reduction {reduction!r}")

    itemsize = jnp.dtype(inputs.dtype).itemsize
    has_alpha = alpha is not None

    vmem_limit, tile_budget = _vmem_budget()
    if tile_n is None:
        tn = _choose_tile_n(n, c, itemsize, has_alpha, tile_budget)
    else:
        tn = _round_up(max(int(tile_n), 16), 16)
    num_tiles = pl.cdiv(n, tn)

    targets_i32 = targets.astype(jnp.int32)
    targets_2d = targets_i32.reshape(n, 1)

    in_specs = [
        pl.BlockSpec((tn, c), lambda i: (i, 0)),   # native-dtype logits stream
        pl.BlockSpec((tn, 1), lambda i: (i, 0)),   # int32 targets (lane-padded)
    ]
    args = [inputs, targets_2d]

    if has_alpha:
        if isinstance(alpha, (float, int)):
            alpha_arr = jnp.full((c,), float(alpha), dtype=jnp.float32)
        else:
            alpha_arr = jnp.asarray(alpha, dtype=jnp.float32).reshape(-1)
        if alpha_arr.shape[0] != c:
            raise ValueError(
                f"alpha size {alpha_arr.shape[0]} does not match C {c}")
        # Tiny XLA gather outside the kernel; streamed per-tile like targets.
        alpha_t = alpha_arr[targets_i32].reshape(n, 1)
        in_specs.append(pl.BlockSpec((tn, 1), lambda i: (i, 0)))
        args.append(alpha_t)

    per_example = (reduction == "none")
    kernel = functools.partial(
        _focal_loss_kernel, gamma=float(gamma), n_valid=n,
        has_alpha=has_alpha, per_example=per_example)

    if per_example:
        out_shape = jax.ShapeDtypeStruct((num_tiles * tn, 1), jnp.float32)
        out_specs = pl.BlockSpec((tn, 1), lambda i: (i, 0))
    else:
        out_shape = jax.ShapeDtypeStruct((num_tiles, 8, 128), jnp.float32)
        out_specs = pl.BlockSpec((1, 8, 128), lambda i: (i, 0, 0))

    out = pl.pallas_call(
        kernel,
        out_shape=out_shape,
        grid=(num_tiles,),
        in_specs=in_specs,
        out_specs=out_specs,
        compiler_params=pltpu.CompilerParams(
            dimension_semantics=("parallel",),
            vmem_limit_bytes=vmem_limit,
        ),
    )(*args)

    if per_example:
        return out[:n, 0]
    total = jnp.sum(out[:, 0, 0])
    if reduction == "mean":
        return total / jnp.float32(n)
    return total


def _focal_loss_ref(inputs, targets, alpha=None, gamma=2.0, reduction="mean"):
    # Pure-JAX reference of the PyTorch module.
    x = inputs.astype(jnp.float32)
    lse = jax.nn.logsumexp(x, axis=-1)
    x_t = jnp.take_along_axis(x, targets[:, None].astype(jnp.int32), axis=-1)[:, 0]
    ce = lse - x_t
    pt = jnp.exp(-ce)
    fl = (1.0 - pt) ** gamma * ce
    if alpha is not None:
        if isinstance(alpha, (float, int)):
            a = jnp.full((inputs.shape[1],), float(alpha), dtype=jnp.float32)
        else:
            a = jnp.asarray(alpha, dtype=jnp.float32)
        fl = a[targets] * fl
    if reduction == "mean":
        return jnp.mean(fl)
    if reduction == "sum":
        return jnp.sum(fl)
    return fl


if __name__ == "__main__":
    key = jax.random.PRNGKey(0)
    k1, k2, k3 = jax.random.split(key, 3)

    N, C = 100, 16
    targets = jax.random.randint(k2, (N,), 0, C, dtype=jnp.int32)

    # Case 1: f32 logits, alpha=None, small tile override to exercise a
    # multi-step grid AND the N % TN remainder masking (100 = 3*32 + 4).
    logits = jax.random.normal(k1, (N, C), dtype=jnp.float32)
    loss = focal_loss(logits, targets, alpha=None, gamma=2.0,
                      reduction="mean", tile_n=32)
    loss = jax.block_until_ready(loss)
    ref = _focal_loss_ref(logits, targets, alpha=None, gamma=2.0)
    assert jnp.allclose(loss, ref, rtol=1e-5, atol=1e-5), (loss, ref)

    # Case 2: bf16 logits (native-dtype DMA), per-class alpha, default tiling
    # (num_tiles >= 2 clamp -> 2 tiles of 64 rows, remainder path exercised).
    alpha = [0.25 + 0.05 * i for i in range(C)]
    logits_bf16 = jax.random.normal(k3, (N, C), dtype=jnp.bfloat16)
    loss2 = focal_loss(logits_bf16, targets, alpha=alpha, gamma=2.0,
                       reduction="mean")
    loss2 = jax.block_until_ready(loss2)
    ref2 = _focal_loss_ref(logits_bf16, targets, alpha=alpha, gamma=2.0)
    assert jnp.allclose(loss2, ref2, rtol=1e-5, atol=1e-5), (loss2, ref2)

    # Case 3: reduction='none' (per-example output) with scalar alpha.
    loss3 = focal_loss(logits, targets, alpha=0.25, gamma=2.0,
                       reduction="none", tile_n=32)
    loss3 = jax.block_until_ready(loss3)
    ref3 = _focal_loss_ref(logits, targets, alpha=0.25, gamma=2.0,
                           reduction="none")
    assert loss3.shape == (N,)
    assert jnp.allclose(loss3, ref3, rtol=1e-5, atol=1e-5), (loss3, ref3)

    print("KERNEL_OK")
</pallas_src>

<mosaic_0001>
module attributes {stable_mosaic.version = 11 : i64} {
  func.func @_focal_loss_kernel(%arg0: i32, %arg1: memref<32x16xf32, #tpu.memory_space<vmem>>, %arg2: memref<32x1xi32, #tpu.memory_space<vmem>>, %arg3: memref<1x8x128xf32, #tpu.memory_space<vmem>>) attributes {dimension_semantics = [#tpu.dimension_semantics<parallel>], iteration_bounds = array<i64: 4>, scalar_prefetch = 0 : i64, scratch_operands = 0 : i64, tpu.core_type = #tpu.core_type<tc>, window_params = [{transform_indices = @transform_0, window_bounds = array<i64: 32, 16>}, {transform_indices = @transform_1, window_bounds = array<i64: 32, 1>}, {transform_indices = @transform_2, window_bounds = array<i64: 1, 8, 128>}]} {
    %c0 = arith.constant 0 : index
    %c0_0 = arith.constant 0 : index
    %0 = vector.load %arg1[%c0, %c0_0] : memref<32x16xf32, #tpu.memory_space<vmem>>, vector<32x16xf32>
    %c0_1 = arith.constant 0 : index
    %c0_2 = arith.constant 0 : index
    %1 = vector.load %arg2[%c0_1, %c0_2] : memref<32x1xi32, #tpu.memory_space<vmem>>, vector<32x1xi32>
    %cst = arith.constant dense<0xFF800000> : vector<32xf32>
    %2 = vector.multi_reduction <maximumf>, %0, %cst [1] : vector<32x16xf32> to vector<32xf32>
    %3 = vector.shape_cast %2 : vector<32xf32> to vector<32x1xf32>
    %4 = vector.broadcast %3 : vector<32x1xf32> to vector<32x16xf32>
    %5 = arith.subf %0, %4 : vector<32x16xf32>
    %6 = math.exp %5 : vector<32x16xf32>
    %cst_3 = arith.constant dense<0.000000e+00> : vector<32xf32>
    %7 = vector.multi_reduction <add>, %6, %cst_3 [1] : vector<32x16xf32> to vector<32xf32>
    %8 = vector.shape_cast %7 : vector<32xf32> to vector<32x1xf32>
    %9 = math.log %8 : vector<32x1xf32>
    %10 = arith.addf %3, %9 : vector<32x1xf32>
    %11 = tpu.iota {dimensions = array<i32: 1>} : vector<1x16xi32>
    %12 = vector.broadcast %11 : vector<1x16xi32> to vector<32x16xi32>
    %13 = vector.broadcast %1 : vector<32x1xi32> to vector<32x16xi32>
    %14 = arith.cmpi eq, %12, %13 : vector<32x16xi32>
    %cst_4 = arith.constant 0.000000e+00 : f32
    %15 = vector.broadcast %cst_4 : f32 to vector<32x16xf32>
    %16 = arith.select %14, %0, %15 : vector<32x16xi1>, vector<32x16xf32>
    %cst_5 = arith.constant dense<0.000000e+00> : vector<32xf32>
    %17 = vector.multi_reduction <add>, %16, %cst_5 [1] : vector<32x16xf32> to vector<32xf32>
    %18 = vector.shape_cast %17 : vector<32xf32> to vector<32x1xf32>
    %19 = arith.subf %10, %18 : vector<32x1xf32>
    %cst_6 = arith.constant 0.000000e+00 : f32
    %20 = vector.broadcast %cst_6 : f32 to vector<32x1xf32>
    %21 = arith.subf %20, %19 : vector<32x1xf32>
    %22 = math.exp %21 : vector<32x1xf32>
    %cst_7 = arith.constant 1.000000e+00 : f32
    %23 = vector.broadcast %cst_7 : f32 to vector<32x1xf32>
    %24 = arith.subf %23, %22 : vector<32x1xf32>
    %cst_8 = arith.constant 0.000000e+00 : f32
    %25 = vector.broadcast %cst_8 : f32 to vector<32x1xf32>
    %26 = arith.maximumf %24, %25 : vector<32x1xf32>
    %27 = arith.mulf %26, %26 : vector<32x1xf32>
    %28 = arith.mulf %27, %19 : vector<32x1xf32>
    %29 = tpu.iota {dimensions = array<i32: 0>} : vector<32x1xi32>
    %c32_i32 = arith.constant 32 : i32
    %30 = arith.muli %arg0, %c32_i32 : i32
    %31 = vector.broadcast %30 : i32 to vector<32x1xi32>
    %32 = arith.addi %31, %29 : vector<32x1xi32>
    %c100_i32 = arith.constant 100 : i32
    %33 = vector.broadcast %c100_i32 : i32 to vector<32x1xi32>
    %34 = arith.cmpi slt, %32, %33 : vector<32x1xi32>
    %cst_9 = arith.constant 0.000000e+00 : f32
    %35 = vector.broadcast %cst_9 : f32 to vector<32x1xf32>
    %36 = arith.select %34, %28, %35 : vector<32x1xi1>, vector<32x1xf32>
    %37 = vector.shape_cast %36 : vector<32x1xf32> to vector<1x32x1xf32>
    %cst_10 = arith.constant dense<0.000000e+00> : vector<1xf32>
    %38 = vector.multi_reduction <add>, %37, %cst_10 [1, 2] : vector<1x32x1xf32> to vector<1xf32>
    %39 = vector.shape_cast %38 : vector<1xf32> to vector<1x1x1xf32>
    %40 = vector.extract %39[0, 0, 0] : f32 from vector<1x1x1xf32>
    %cst_11 = arith.constant 0.000000e+00 : f32
    %41 = vector.broadcast %cst_11 : f32 to vector<1x8x128xf32>
    %42 = vector.broadcast %40 : f32 to vector<1x8x128xf32>
    %43 = arith.addf %41, %42 : vector<1x8x128xf32>
    %c0_12 = arith.constant 0 : index
    %c0_13 = arith.constant 0 : index
    %c0_14 = arith.constant 0 : index
    %44 = vector.load %arg3[%c0_12, %c0_13, %c0_14] : memref<1x8x128xf32, #tpu.memory_space<vmem>>, vector<1x8x128xf32>
    tpu.vector_store %arg3[%c0_12, %c0_13, %c0_14], %43 {strides = array<i32>} : memref<1x8x128xf32, #tpu.memory_space<vmem>>, vector<1x8x128xf32>,
    return
  }
  func.func @transform_0(%arg0: i32) -> (i32, i32) {
    %c0_i32 = arith.constant 0 : i32
    %c0_i32_0 = arith.constant 0 : i32
    return %arg0, %c0_i32 : i32, i32
  }
  func.func @transform_1(%arg0: i32) -> (i32, i32) {
    %c0_i32 = arith.constant 0 : i32
    %c0_i32_0 = arith.constant 0 : i32
    return %arg0, %c0_i32 : i32, i32
  }
  func.func @transform_2(%arg0: i32) -> (i32, i32, i32) {
    %c0_i32 = arith.constant 0 : i32
    %c0_i32_0 = arith.constant 0 : i32
    %c0_i32_1 = arith.constant 0 : i32
    return %arg0, %c0_i32, %c0_i32_0 : i32, i32, i32
  }
}

</mosaic_0001>

<bundles_post_ra>
// kernel: tpu_custom_call.1
= control target key start
LH: loop header
LB: loop body
LE: loop exit
PB: predicated region body
PF: predicated region fallthrough
CT: control target
= control target key end

     0   :  { %7 = vsyncpa [#allocation3], 0  ;;  %s750_s0 = inlined_call_operand.vmem [shape: f32[100,16], index: 0, kind: input, shape index: {}]   ;;  %s751_s1 = inlined_call_operand.vmem [shape: s32[100,1], index: 1, kind: input, shape index: {}]   ;;  %s752_s2 = inlined_call_operand.hbm [shape: f32[4,8,128], index: 2, kind: output, shape index: {}]  }
   0x1   :  { %9 = vsyncpa [#allocation3 + $0x1], 0  ;;  %s616_s9 = smov 0   ;;  %s618_s10 = smov 0  }
   0x2   :  { %s620_s11 = smov 0   ;;  %s622_s12 = smov 0  }
   0x3 LB: > { %s637_s13 = sadd.s32 4294967295, %s597_s12   ;;  %s453_s14 = sadd.s32 4294967294, %s597_s12   ;;  %s597_s12 = sphi %s622_s12, %s758_s12   ;;  %s593_s11 = sphi %s620_s11, %s757_s11   ;;  %s589_s10 = sphi %s618_s10, %s756_s10   ;;  %s585_s9 = sphi %s616_s9, %s755_s9  }
   0x4   : > { %s641_s15 = sadd.s32 1, %s597_s12   ;;  %s74_s16 = sadd.s32 1, %s593_s11 }
   0x5   : > { %s71_s17 = ssub.s32 %s597_s12, %s641_s15  ;;  %p84_p0 = scmp.ne.s32.totalorder %s593_s11, %s589_s10 }
   0x6   : > { %p72_p1 = scmp.eq.s32.totalorder %s71_s17, 0  ;;  %p85_p2 = scmp.eq.s32.totalorder %s637_s13, 3 }
   0x7   : > { %p90_p3 = scmp.ne.s32.totalorder %s589_s10, %s585_s9  ;;  %p91_p4 = scmp.eq.s32.totalorder %s453_s14, 3 }
   0x8   : > { %s652_s18 = scalar_select %p72_p1, %s593_s11, %s74_s16  }
   0x9   : > { %p654_p5 = por %p85_p2, %p84_p0  ;;  %p658_p6 = por %p91_p4, %p90_p3 }
   0xa   : > { %p456_p7 = scmp.ge.s32.totalorder %s597_s12, 1  ;;  %p143_p8 = scmp.lt.s32.totalorder %s597_s12, 5 }
   0xc   : > { %p144_p9 = pnand %p456_p7, %p143_p8 }
   0xd   : > { %s458_s21 = sshll.u32 (!%p144_p9), %s637_s13, 2  ;;  %v599_v0 = vmov (!%p144_p9), 0   ;;  %vm214_vm0 = vcmask (!%p144_p9), 130048   ;;  %v263_v26 = vlaneseq (!%p144_p9)  ;;  %s462_s29 = sshll.u32 (!%p144_p9), %s637_s13, 5  ;;  %vm348_vm8 = vcmask (!%p144_p9), 7168  }
   0xe   : > { %147 = sbr.rel (%p144_p9) target bundleno = 598 (0x256), region = 28  ;;  %p183_p10 = scmp.lt.s32.totalorder (!%p144_p9), %s458_s21, 12  ;;  %510 = vset.pattern.permute.xlu1 (!%p144_p9), %v599_v0  ;;  %509 = vset.pattern.permute.xlu0 (!%p144_p9), %v599_v0 }
   0xf   : > { %v264_v27 = vand.u32 (!%p144_p9), 127, %v263_v26  ;;  %s175_s30 = sand.u32 (!%p144_p9), 1, %s589_s10   ;;  %s464_s6 = sshll.u32 (!%p144_p9), %s637_s13, 7 }
  0x10   : > { %s457_s3 = sshll.u32 (!%p144_p9), %s175_s30, 3  ;;  %s710_s16 = scalar_lea.hbm (!%p144_p9), %s752_s2, %s464_s6 }
  0x11   : > { %s177_s4 = scalar_lea.vmem (!%p144_p9), [#allocation2], %s457_s3  ;;  %s369_s17 = scalar_lea.sflag (!%p144_p9), [#allocation3], %s175_s30 }
  0x12   : > { %s382_s5 = sshll.u32 (!%p144_p9), %s177_s4, 4  ;;  %s600_s13 = smov (!%p144_p9), [#allocation2]   ;;  %s705_s5 = int_to_ptr.vmem [resolvable:$true] %s382_s5 }
  0x15   : > { %s760_s21 = smov (!%p183_p10, %s458_s21), 12 }
  0x16   : > { %s459_s22 = sshll.u32 %s760_s21, 3  ;;  %s535_s21 = scalar_lea.vmem %s705_s5, 128 }
  0x17   : > { %s186_s25 = scalar_lea.vmem %s750_s0, %s459_s22  ;;  %s200_s28 = scalar_lea.vmem %s751_s1, %s459_s22 }
  0x18   : > { %v206_v1 = vld [vmem:[%s186_s25] sm:$0xff]  ;;  %v208_v2 = vld [vmem:[%s186_s25 + $0x10] sm:$0xff]  ;;  %v207_v3 = vld [vmem:[%s186_s25 + $0x8] sm:$0xff]  ;;  %p536_p11 = scmp.ne.s32.totalorder %s705_s5, %s535_s21  ;;  %s539_s22 = sshll.u32 %s600_s13, 4  ;;  %s540_s22 = int_to_ptr.vmem [resolvable:$false] %s539_s22 }
  0x19   : > { %v215_v4 = vsel %vm214_vm0, %v206_v1, -inf  ;;  %v221_v5 = vsel %vm214_vm0, %v208_v2, -inf  ;;  %v670_v6 = vld [vmem:[%s186_s25 + $0x18] sm:$0xff]  ;;  %v218_v7 = vsel %vm214_vm0, %v207_v3, -inf  ;;  %v211_v9 = vld [vmem:[%s200_s28 + $0x8] sm:$0xff]  ;;  %v212_v10 = vld [vmem:[%s200_s28 + $0x10] sm:$0xff]  ;;  %p542_p0 = scmp.lt.s32.totalorder %s705_s5, %s540_s22 }
  0x1a   : > { %216 = vmax.xlane.f32.xlu0 %v215_v4  ;;  %222 = vmax.xlane.f32.xlu1 %v221_v5  ;;  %v224_v8 = vsel %vm214_vm0, %v670_v6, -inf  ;;  %v210_v11 = vld [vmem:[%s200_s28] sm:$0xff]  ;;  %v213_v12 = vld [vmem:[%s200_s28 + $0x18] sm:$0xff]  ;;  %p537_p12 = pnand %p536_p11, %p654_p5  ;;  %s541_s23 = scalar_lea.vmem %s540_s22, 256 }
  0x1b   : > { %p543_p1 = scmp.lt.s32.totalorder %s541_s23, %s535_s21 }
  0x1c   : > { %p538_p13 = pneg %p537_p12 }
  0x1d   : > { %p544_p2 = por %p543_p1, %p542_p0 }
  0x1e   : > { %219 = vmax.xlane.f32.xlu0 %v218_v7  ;;  %225 = vmax.xlane.f32.xlu1 %v224_v8 }
  0x1f   : > { %p545_p3 = pnand %p544_p2, %p538_p13 }
  0x2f   : > { %269 = vperm.xlu1 %510, %v211_v9  }
  0x33   : > { %272 = vperm.xlu1 %510, %v212_v10  }
  0x34   : > { %266 = vperm.xlu0 %509, %v210_v11  }
  0x37   : > { %275 = vperm.xlu1 %510, %v213_v12  }
  0xa7   : > { %v217_v13 = vpop.xlane.xlu0 %216  ;;  %v678_v14 = vpop.xlane.xlu1 %222 }
  0xa8   : > { %v227_v15 = vsub.f32 %v206_v1, %v217_v13  ;;  %v229_v16 = vsub.f32 %v208_v2, %v678_v14 }
  0xaa   : > { %v231_v17 = vmul.f32 1.442695, %v227_v15  ;;  %v235_v18 = vmul.f32 1.442695, %v229_v16  ;;  %v330_v16 = vshrl.u32 %v263_v26, 7 }
  0xab   : > { %v681_v19 = vpop.xlane.xlu0 %219  ;;  %v683_v20 = vpop.xlane.xlu1 %225 }
  0xac   : > { %511 = vpow2.f32 %v231_v17  ;;  %v228_v21 = vsub.f32 %v207_v3, %v681_v19  ;;  %v230_v22 = vsub.f32 %v670_v6, %v683_v20 }
  0xad   : > { %513 = vpow2.f32 %v235_v18  ;;  %v335_v18 = vstv %s462_s29 }
  0xae   : > { %v233_v23 = vmul.f32 1.442695, %v228_v21  ;;  %v237_v24 = vmul.f32 1.442695, %v230_v22  ;;  %v332_v21 = vadd.s32 16, %v330_v16  ;;  %v331_v22 = vadd.s32 8, %v330_v16 }
  0xaf   : > { %v270_v25 = vpop.permute.xlu1 %269 }
  0xb0   : > { %515 = vpow2.f32 %v233_v23  ;;  %vm278_vm3 = vcmp.eq.s32.totalorder %v264_v27, %v270_v25 }
  0xb1   : > { %517 = vpow2.f32 %v237_v24  ;;  %v282_v43 = vsel %vm278_vm3, %v207_v3, 0.0  ;;  %v336_v24 = vadd.s32 %v335_v18, %v330_v16 }
  0xb2   : > { %v288_v44 = vsel %vm214_vm0, %v282_v43, 0.0 }
  0xb3   : > { %v273_v29 = vpop.permute.xlu1 %272  ;;  %v267_v32 = vpop.permute.xlu0 %266  ;;  %vm340_vm5 = vcmp.lt.s32.totalorder %v336_v24, 100 }
  0xb4   : > { %vm279_vm1 = vcmp.eq.s32.totalorder %v264_v27, %v273_v29  ;;  %vm277_vm2 = vcmp.eq.s32.totalorder %v264_v27, %v267_v32  ;;  %v333_v29 = vadd.s32 24, %v330_v16  ;;  %v337_v32 = vadd.s32 %v335_v18, %v331_v22 }
  0xb5   : > { %v283_v35 = vsel %vm279_vm1, %v208_v2, 0.0  ;;  %v281_v40 = vsel %vm277_vm2, %v206_v1, 0.0 }
  0xb6   : > { %v512_v28 = vpop.eup %511  ;;  %v291_v39 = vsel %vm214_vm0, %v283_v35, 0.0  ;;  %v285_v41 = vsel %vm214_vm0, %v281_v40, 0.0  ;;  %vm341_vm7 = vcmp.lt.s32.totalorder %v337_v32, 100 }
  0xb7   : > { %v514_v30 = vpop.eup %513  ;;  %v239_v31 = vsel %vm214_vm0, %v512_v28, 0.0  ;;  %v276_v42 = vpop.permute.xlu1 %275 }
  0xb8   : > { %240 = vadd.xlane.f32.xlu1 %v239_v31  ;;  %v245_v33 = vsel %vm214_vm0, %v514_v30, 0.0  ;;  %vm280_vm4 = vcmp.eq.s32.totalorder %v264_v27, %v276_v42  ;;  %v338_v30 = vadd.s32 %v335_v18, %v332_v21 }
  0xb9   : > { %v284_v45 = vsel %vm280_vm4, %v670_v6, 0.0 }
  0xba   : > { %v516_v34 = vpop.eup %515  ;;  %v294_v46 = vsel %vm214_vm0, %v284_v45, 0.0  ;;  %vm342_vm6 = vcmp.lt.s32.totalorder %v338_v30, 100 }
  0xbb   : > { %v518_v36 = vpop.eup %517  ;;  %v242_v37 = vsel %vm214_vm0, %v516_v34, 0.0 }
  0xbc   : > { %246 = vadd.xlane.f32.xlu1 %v245_v33  ;;  %243 = vadd.xlane.f32.xlu0 %v242_v37  ;;  %v248_v38 = vsel %vm214_vm0, %v518_v36, 0.0 }
  0xc0   : > { %249 = vadd.xlane.f32.xlu1 %v248_v38  ;;  %292 = vadd.xlane.f32.xlu0 %v291_v39  ;;  %v339_v38 = vadd.s32 %v335_v18, %v333_v29 }
  0xc2   : > { %vm343_vm9 = vcmp.lt.s32.totalorder %v339_v38, 100 }
  0xc4   : > { %286 = vadd.xlane.f32.xlu1 %v285_v41 }
  0xc8   : > { %289 = vadd.xlane.f32.xlu1 %v288_v44 }
  0xcc   : > { %295 = vadd.xlane.f32.xlu1 %v294_v46 }
 0x145   : > { %v241_v47 = vpop.xlane.xlu1 %240 }
 0x146   : > { %519 = vlog2.f32 %v241_v47 }
 0x149   : > { %v247_v48 = vpop.xlane.xlu1 %246  ;;  %v244_v49 = vpop.xlane.xlu0 %243 }
 0x14a   : > { %521 = vlog2.f32 %v247_v48 }
 0x14b   : > { %523 = vlog2.f32 %v244_v49 }
 0x14d   : > { %v250_v50 = vpop.xlane.xlu1 %249  ;;  %v293_v0 = vpop.xlane.xlu0 %292 }
 0x14e   : > { %525 = vlog2.f32 %v250_v50 }
 0x150   : > { %v520_v51 = vpop.eup %519 }
 0x151   : > { %v252_v52 = vmul.f32 0.6931472, %v520_v51  ;;  %v287_v53 = vpop.xlane.xlu1 %286 }
 0x153   : > { %v259_v54 = vadd.f32 %v252_v52, %v217_v13 }
 0x154   : > { %v522_v55 = vpop.eup %521 }
 0x155   : > { %v524_v56 = vpop.eup %523  ;;  %v256_v57 = vmul.f32 0.6931472, %v522_v55  ;;  %v297_v58 = vsub.f32 %v259_v54, %v287_v53  ;;  %v290_v60 = vpop.xlane.xlu1 %289 }
 0x156   : > { %v254_v59 = vmul.f32 0.6931472, %v524_v56 }
 0x157   : > { %v301_v61 = vsub.f32 0.0, %v297_v58  ;;  %v261_v62 = vadd.f32 %v256_v57, %v678_v14 }
 0x158   : > { %v526_v63 = vpop.eup %525  ;;  %v260_v1 = vadd.f32 %v254_v59, %v681_v19 }
 0x159   : > { %v258_v2 = vmul.f32 0.6931472, %v526_v63  ;;  %v305_v3 = vmul.f32 1.442695, %v301_v61  ;;  %v299_v4 = vsub.f32 %v261_v62, %v293_v0  ;;  %v296_v9 = vpop.xlane.xlu1 %295 }
 0x15a   : > { %v298_v5 = vsub.f32 %v260_v1, %v290_v60 }
 0x15b   : > { %527 = vpow2.f32 %v305_v3  ;;  %v303_v6 = vsub.f32 0.0, %v299_v4  ;;  %v262_v7 = vadd.f32 %v258_v2, %v683_v20 }
 0x15c   : > { %v302_v8 = vsub.f32 0.0, %v298_v5 }
 0x15d   : > { %v309_v10 = vmul.f32 1.442695, %v303_v6  ;;  %v300_v11 = vsub.f32 %v262_v7, %v296_v9 }
 0x15e   : > { %v307_v12 = vmul.f32 1.442695, %v302_v8 }
 0x15f   : > { %529 = vpow2.f32 %v309_v10  ;;  %v304_v13 = vsub.f32 0.0, %v300_v11 }
 0x160   : > { %531 = vpow2.f32 %v307_v12 }
 0x161   : > { %v311_v14 = vmul.f32 1.442695, %v304_v13 }
 0x163   : > { %533 = vpow2.f32 %v311_v14 }
 0x165   : > { %v528_v15 = vpop.eup %527 }
 0x166   : > { %v313_v17 = vsub.f32 1.0, %v528_v15 }
 0x168   : > { %v317_v19 = vmax.f32 %v313_v17, 0.0 }
 0x169   : > { %v530_v20 = vpop.eup %529 }
 0x16a   : > { %v532_v23 = vpop.eup %531  ;;  %v321_v25 = vmul.f32 %v317_v19, %v317_v19  ;;  %v315_v27 = vsub.f32 1.0, %v530_v20 }
 0x16b   : > { %v314_v28 = vsub.f32 1.0, %v532_v23 }
 0x16c   : > { %v319_v31 = vmax.f32 %v315_v27, 0.0  ;;  %v325_v34 = vmul.f32 %v321_v25, %v297_v58 }
 0x16d   : > { %v534_v33 = vpop.eup %533  ;;  %v318_v35 = vmax.f32 %v314_v28, 0.0 }
 0x16e   : > { %v323_v26 = vmul.f32 %v319_v31, %v319_v31  ;;  %v316_v36 = vsub.f32 1.0, %v534_v33  ;;  %v344_v41 = vsel %vm340_vm5, %v325_v34, 0.0 }
 0x16f   : > { %v322_v37 = vmul.f32 %v318_v35, %v318_v35  ;;  %v349_v46 = vsel %vm348_vm8, %v344_v41, 0.0 }
 0x170   : > { %v327_v39 = vmul.f32 %v323_v26, %v299_v4  ;;  %v320_v40 = vmax.f32 %v316_v36, 0.0 }
 0x171   : > { %v326_v42 = vmul.f32 %v322_v37, %v298_v5 }
 0x172   : > { %v324_v43 = vmul.f32 %v320_v40, %v320_v40  ;;  %v346_v44 = vsel %vm342_vm6, %v327_v39, 0.0 }
 0x173   : > { %v345_v45 = vsel %vm341_vm7, %v326_v42, 0.0  ;;  %v352_v51 = vsel %vm348_vm8, %v346_v44, 0.0 }
 0x174   : > { %v350_v47 = vsel %vm348_vm8, %v345_v45, 0.0  ;;  %v328_v48 = vmul.f32 %v324_v43, %v300_v11 }
 0x175   : > { %v351_v49 = vadd.f32 %v350_v47, %v349_v46 }
 0x176   : > { %v347_v50 = vsel %vm343_vm9, %v328_v48, 0.0 }
 0x177   : > { %v353_v52 = vadd.f32 %v352_v51, %v351_v49  ;;  %v354_v53 = vsel %vm348_vm8, %v347_v50, 0.0 }
 0x179   : > { %v355_v54 = vadd.f32 %v354_v53, %v353_v52 }
 0x17b   : > { %356 = vadd.xlane.f32.xlu0 %v355_v54 }
 0x208   : > { %v357_v55 = vpop.xlane.xlu0 %356 }
 0x209   : > { %v358_v56 = vrot.slane %v357_v55, 4 }
 0x20b   : > { %v359_v57 = vadd.f32 %v358_v56, %v357_v55 }
 0x20d   : > { %v360_v58 = vrot.slane %v359_v57, 2 }
 0x20f   : > { %v361_v59 = vadd.f32 %v360_v58, %v359_v57 }
 0x211   : > { %v362_v60 = vrot.slane %v361_v59, 1 }
 0x213   : > { %v363_v61 = vadd.f32 %v362_v60, %v361_v59 }
 0x215   : > { %467 = vpush %v363_v61 }
 0x246   : > { %s468_s7 = spop %467 }
 0x247   : > { %v365_v62 = vstv %s468_s7 }
 0x248   : > { %367 = vst [vmem:[%s177_s4] sm:$0xff] %v365_v62 }
 0x249   : > { %548 = shalt.err (!%p545_p3)
}
 0x24a   : > { %s549_s24 = scalar_lea.hbm %s710_s16, 128  ;;  %s553_s27 = scalar_lea.hbm %s752_s2, 512 }
 0x24b   : > { %p550_p4 = scmp.ne.s32.totalorder %s710_s16, %s549_s24  ;;  %p554_p9 = scmp.lt.u32.totalorder %s710_s16, %s752_s2 }
 0x24c   : > { %p555_p10 = scmp.lt.u32.totalorder %s553_s27, %s549_s24  ;;  %p557_p12 = scmp.lt.u32.totalorder %s549_s24, %s710_s16 }
 0x24d   : > { %p551_p7 = pnand %p550_p4, %p654_p5 }
 0x24e   : > { %p556_p11 = por %p555_p10, %p554_p9 }
 0x24f   : > { %p552_p8 = pneg %p551_p7 }
 0x250   : > { %p558_p13 = por %p557_p12, %p556_p11 }
 0x252   : > { %p559_p0 = pnand %p558_p13, %p552_p8 }
 0x254   : > { %562 = shalt.err (!%p559_p0)
}
 0x255   : > { %469 = dma.vmem_to_hbm [thread:$0]  (%p654_p5), %s705_s5, 128, %s710_s16, %s369_s17  }
 0x256 PF: > { %p475_p1 = scmp.ge.s32.totalorder %s597_s12, 2  ;;  %s394_s30 = sand.u32 1, %s585_s9  }
 0x257   : > { %s395_s3 = scalar_lea.sflag [#allocation3], %s394_s30 }
 0x258   : > { %p472_p2 = pnand %p475_p1, %p658_p6 }
 0x25a   : > { %580 = dma.done.wait (!%p472_p2), %s395_s3, 128  }
 0x25b   : > { %582 = vsyncadd (!%p472_p2), %s395_s3, 4294967168  ;;  %p12_p3 = scmp.ge.s32.totalorder %s641_s15, 6   ;;  %s755_s9 = smov %s589_s10 }
 0x25c   : > { %s756_s10 = smov %s593_s11  ;;  %s757_s11 = smov %s652_s18 }
 0x25d   : > { %s758_s12 = smov %s641_s15  ;;  %14 = sbr.rel (!%p12_p3) target bundleno = 3 (0x3), region = 66 }
 0x264   :  { %400 = vsyncpa [#allocation3], 1 }
 0x265   :  { %402 = vsyncpa [#allocation3 + $0x1], 1 }

</bundles_post_ra>
